<compile_context>
chip_gen: v6e
topology: v6e:2x2x1
jax: 0.10.0
libtpu: 0.0.40
codegen_flags: <defaults>
</compile_context>

<pallas_src>
import jax
import jax.numpy as jnp
from jax import lax
from jax.experimental import pallas as pl
from jax.experimental.pallas import tpu as pltpu


def _round_up(a, b):
    return (a + b - 1) // b * b


def _vmem_capacity_bytes():
    """Physical VMEM per TensorCore; conservative 64 MiB fallback (v7x)."""
    try:
        info = pltpu.get_tpu_info()
        for attr in ("vmem_capacity_bytes", "vmem_bytes", "vmem_size_bytes"):
            v = getattr(info, attr, None)
            if v:
                return int(v)
    except Exception:
        pass
    return 64 * 2**20


def _footprint(tm, tn, k_pad, bytes_c, bytes_o):
    """Conservative VMEM footprint (weight/bias counted double-buffered even though we
    request Buffered(1), so the fallback path still fits)."""
    return (2 * tm * k_pad * bytes_c      # x blocks (double-buffered)
            + 2 * k_pad * tn * bytes_c    # weight
            + 2 * 8 * tn * 4              # bias (f32)
            + 2 * tm * tn * bytes_o)      # output blocks (double-buffered)


def _pick_tiles(M, k_pad, e_pad, bytes_c, bytes_o, sublane, budget):
    """Pick (tm, tn): output-column tile tn (usually the whole padded E) and the largest
    row tile tm whose pipelined footprint fits the VMEM budget."""
    tn = e_pad
    # Fallback E-split: only when the resident weight tile alone would eat the budget.
    while tn > 128 and 2 * k_pad * tn * bytes_c > budget // 3:
        tn = max(128, _round_up(tn // 2, 128))
    tm = sublane
    for cand in (2048, 1024, 512, 256, 128, 64, 32, 16, 8):
        if cand % sublane:
            continue
        if _footprint(cand, tn, k_pad, bytes_c, bytes_o) <= budget:
            tm = cand
            break
    return min(tm, _round_up(M, sublane)), tn


def _spec(shape, index_map, buffer_count=None):
    """BlockSpec, optionally with pipeline_mode=pl.Buffered(n); falls back if unsupported."""
    if buffer_count is not None and hasattr(pl, "Buffered"):
        try:
            return pl.BlockSpec(shape, index_map, pipeline_mode=pl.Buffered(buffer_count))
        except TypeError:
            pass
    return pl.BlockSpec(shape, index_map)


def _patch_embed_kernel(x_ref, w_ref, b_ref, o_ref):
    # x_ref: (tm, K_pad), w_ref: (K_pad, tn), b_ref: (8, tn) f32 (rows identical),
    # o_ref: (tm, tn).  MXU matmul with f32 accumulation + bias add.
    acc = jnp.dot(x_ref[...], w_ref[...], preferred_element_type=jnp.float32)
    o_ref[...] = (acc + b_ref[0:1, :]).astype(o_ref.dtype)


def patch_embed(x, conv_w, conv_b, *, patch_size, flatten=True,
                compute_dtype=None, out_dtype=None, single_buffer_weights=True):
    """Forward pass of PatchEmbed (norm_layer=None -> Identity).

    x: (B, C, H, W); conv_w: (E, C, pH, pW); conv_b: (E,).
    Returns (B, num_patches, E) if flatten else (B, E, Gh, Gw).
    """
    B, C, H, W = x.shape
    pH, pW = patch_size
    assert H % pH == 0 and W % pW == 0
    Gh, Gw = H // pH, W // pW
    E = conv_w.shape[0]
    K = C * pH * pW
    M = B * Gh * Gw

    if out_dtype is None:
        out_dtype = x.dtype
    if compute_dtype is None:
        # bf16 operands (f32 MXU accumulation) are the fast path on every TPU generation;
        # pass compute_dtype=jnp.float32 to opt out for exactness.
        compute_dtype = jnp.bfloat16 if x.dtype == jnp.float32 else x.dtype
    compute_dtype = jnp.dtype(compute_dtype)
    out_dtype = jnp.dtype(out_dtype)
    bytes_c = compute_dtype.itemsize
    bytes_o = out_dtype.itemsize
    sublane = max(8, 32 // bytes_c)          # f32 -> 8, bf16 -> 16 rows per vreg sublane set

    # Contraction-dim padding: align K to 128 (bump to the 256-wide MXU when nearly free).
    if K % 128 == 0:
        k_pad = K
    elif K > 128:
        k_pad = _round_up(K, 128)
        if k_pad % 256 and _round_up(K, 256) - K <= K // 8:
            k_pad = _round_up(K, 256)
    else:
        k_pad = _round_up(K, sublane)

    # Lane-dense output / weight: pad E up to a multiple of 128.
    e_pad = _round_up(E, 128)

    # Device-derived VMEM budget (headroom for compiler-internal scratch).
    cap = _vmem_capacity_bytes()
    budget = max(min(cap - 16 * 2**20, 96 * 2**20), 8 * 2**20)

    tm, tn = _pick_tiles(M, k_pad, e_pad, bytes_c, bytes_o, sublane, budget)
    e_pad = _round_up(e_pad, tn)             # make tn divide the padded E exactly
    gm, gn = pl.cdiv(M, tm), e_pad // tn

    # Patchify: (B,C,Gh,pH,Gw,pW) -> (B,Gh,Gw,C,pH,pW) -> (M, K), matching Conv2d's
    # (E, C*pH*pW) weight layout.  Materialized by XLA so the kernel's x read is a
    # contiguous (tm, K_pad) DMA.
    patches = (
        x.reshape(B, C, Gh, pH, Gw, pW)
        .transpose(0, 2, 4, 1, 3, 5)
        .reshape(M, K)
        .astype(compute_dtype)
    )
    if k_pad != K:
        patches = jnp.pad(patches, ((0, 0), (0, k_pad - K)))

    w_mat = conv_w.reshape(E, K).T.astype(compute_dtype)        # (K, E)
    bias = conv_b.astype(jnp.float32)
    if k_pad != K or e_pad != E:
        w_mat = jnp.pad(w_mat, ((0, k_pad - K), (0, e_pad - E)))
    if e_pad != E:
        bias = jnp.pad(bias, (0, e_pad - E))
    # Sublane-aligned bias block (avoid a 1-row block); kernel reads row 0.
    bias2d = jnp.broadcast_to(bias.reshape(1, e_pad), (8, e_pad))

    need = _footprint(tm, tn, k_pad, bytes_c, bytes_o)
    # Never let the limit fall below the actual footprint (big-E / f32 corner cases).
    vmem_limit = int(max(budget, need + need // 8))

    # Weight / bias have constant index maps only when the E axis is not split.
    buffered1 = 1 if (single_buffer_weights and gn == 1) else None

    out = pl.pallas_call(
        _patch_embed_kernel,
        out_shape=jax.ShapeDtypeStruct((M, e_pad), out_dtype),
        grid_spec=pltpu.PrefetchScalarGridSpec(
            num_scalar_prefetch=0,
            grid=(gm, gn),
            in_specs=[
                pl.BlockSpec((tm, k_pad), lambda i, j: (i, 0)),
                _spec((k_pad, tn), lambda i, j: (0, j), buffered1),
                _spec((8, tn), lambda i, j: (0, j), buffered1),
            ],
            out_specs=pl.BlockSpec((tm, tn), lambda i, j: (i, j)),
        ),
        compiler_params=pltpu.CompilerParams(
            dimension_semantics=("parallel", "parallel"),   # shard row/col tiles across TCs
            vmem_limit_bytes=vmem_limit,
        ),
    )(patches, w_mat, bias2d)

    if e_pad != E:
        out = out[:, :E]
    if flatten:
        return out.reshape(B, Gh * Gw, E)                       # flatten(2).transpose(1,2)
    return out.reshape(B, Gh, Gw, E).transpose(0, 3, 1, 2)      # NCHW conv output


def _reference(x, conv_w, conv_b, patch_size):
    """Pure-JAX f32 reference (HIGHEST precision): strided conv == patchify + matmul."""
    B, C, H, W = x.shape
    pH, pW = patch_size
    Gh, Gw = H // pH, W // pW
    E = conv_w.shape[0]
    K = C * pH * pW
    patches = (
        x.reshape(B, C, Gh, pH, Gw, pW)
        .transpose(0, 2, 4, 1, 3, 5)
        .reshape(B * Gh * Gw, K)
    )
    y = jnp.dot(patches, conv_w.reshape(E, K).T,
                precision=lax.Precision.HIGHEST) + conv_b
    return y.reshape(B, Gh * Gw, E)


if __name__ == "__main__":
    # Small, module-consistent shapes: img 16x16, patch 4x4, 4 channels, embed 32.
    B, C = 2, 4
    img_size = (16, 16)
    patch_size = (4, 4)
    embed_dim = 32

    key = jax.random.PRNGKey(0)
    kx, kw, kb = jax.random.split(key, 3)
    x = jax.random.normal(kx, (B, C, *img_size), dtype=jnp.float32)
    conv_w = 0.05 * jax.random.normal(
        kw, (embed_dim, C, patch_size[0], patch_size[1]), dtype=jnp.float32)
    conv_b = 0.05 * jax.random.normal(kb, (embed_dim,), dtype=jnp.float32)

    static = ("patch_size", "flatten", "compute_dtype", "out_dtype", "single_buffer_weights")
    fwd = jax.jit(patch_embed, static_argnames=static)

    ref = _reference(x, conv_w, conv_b, patch_size)
    n_patches = (img_size[0] // patch_size[0]) * (img_size[1] // patch_size[1])

    def run(**kw):
        return jax.block_until_ready(
            fwd(x, conv_w, conv_b, patch_size=patch_size, **kw))

    # Default fast path: bf16 operands, f32 MXU accumulation.
    sbw = True
    try:
        out_fast = run(single_buffer_weights=sbw)
    except Exception:
        # Running jax does not accept single-buffered (Buffered(1)) constant operands:
        # retry with default double buffering (perf-only feature).
        sbw = False
        out_fast = run(single_buffer_weights=sbw)
    assert out_fast.shape == (B, n_patches, embed_dim)
    assert jnp.allclose(out_fast.astype(jnp.float32), ref, atol=5e-2, rtol=5e-2)

    # Exact-ish f32 operand path (opt-out of the bf16 default).
    out_f32 = run(compute_dtype=jnp.float32, single_buffer_weights=sbw)
    assert out_f32.shape == (B, n_patches, embed_dim)
    assert jnp.allclose(out_f32, ref, atol=1e-3, rtol=1e-3)

    # bf16 output stream (halves the store traffic, useful on v5e).
    out_bf16 = run(out_dtype=jnp.bfloat16, single_buffer_weights=sbw)
    assert out_bf16.dtype == jnp.bfloat16
    assert jnp.allclose(out_bf16.astype(jnp.float32), ref, atol=5e-2, rtol=5e-2)

    # flatten=False returns the NCHW conv-style layout.
    out_nchw = run(flatten=False, single_buffer_weights=sbw)
    assert out_nchw.shape == (B, embed_dim,
                              img_size[0] // patch_size[0], img_size[1] // patch_size[1])

    print("KERNEL_OK")
</pallas_src>

<mosaic_0001>
module attributes {stable_mosaic.version = 11 : i64} {
  func.func @_patch_embed_kernel(%arg0: i32, %arg1: i32, %arg2: memref<32x64xbf16, #tpu.memory_space<vmem>>, %arg3: memref<64x128xbf16, #tpu.memory_space<vmem>>, %arg4: memref<8x128xf32, #tpu.memory_space<vmem>>, %arg5: memref<32x128xf32, #tpu.memory_space<vmem>>) attributes {dimension_semantics = [#tpu.dimension_semantics<parallel>, #tpu.dimension_semantics<parallel>], iteration_bounds = array<i64: 1, 1>, scalar_prefetch = 0 : i64, scratch_operands = 0 : i64, tpu.core_type = #tpu.core_type<tc>, window_params = [{transform_indices = @transform_0, window_bounds = array<i64: 32, 64>}, {pipeline_mode = #tpu.pipeline_mode<synchronous>, transform_indices = @transform_1, window_bounds = array<i64: 64, 128>}, {pipeline_mode = #tpu.pipeline_mode<synchronous>, transform_indices = @transform_2, window_bounds = array<i64: 8, 128>}, {transform_indices = @transform_3, window_bounds = array<i64: 32, 128>}]} {
    %c0 = arith.constant 0 : index
    %c0_0 = arith.constant 0 : index
    %0 = vector.load %arg2[%c0, %c0_0] : memref<32x64xbf16, #tpu.memory_space<vmem>>, vector<32x64xbf16>
    %c0_1 = arith.constant 0 : index
    %c0_2 = arith.constant 0 : index
    %1 = vector.load %arg3[%c0_1, %c0_2] : memref<64x128xbf16, #tpu.memory_space<vmem>>, vector<64x128xbf16>
    %cst = arith.constant dense<0.000000e+00> : vector<32x128xf32>
    %2 = tpu.matmul %0, %1, %cst {dimension_numbers = #tpu.dot_dimension_numbers<[1], [0], [0], [1], [0, 0, 1, 1], [], []>} : vector<32x64xbf16>, vector<64x128xbf16>, vector<32x128xf32> -> vector<32x128xf32>
    %c0_3 = arith.constant 0 : index
    %c0_4 = arith.constant 0 : index
    %3 = vector.load %arg4[%c0_3, %c0_4] : memref<8x128xf32, #tpu.memory_space<vmem>>, vector<1x128xf32>
    %4 = vector.broadcast %3 : vector<1x128xf32> to vector<32x128xf32>
    %5 = arith.addf %2, %4 : vector<32x128xf32>
    %c0_5 = arith.constant 0 : index
    %c0_6 = arith.constant 0 : index
    %6 = vector.load %arg5[%c0_5, %c0_6] : memref<32x128xf32, #tpu.memory_space<vmem>>, vector<32x128xf32>
    tpu.vector_store %arg5[%c0_5, %c0_6], %5 {strides = array<i32>} : memref<32x128xf32, #tpu.memory_space<vmem>>, vector<32x128xf32>,
    return
  }
  func.func @transform_0(%arg0: i32, %arg1: i32) -> (i32, i32) {
    %c0_i32 = arith.constant 0 : i32
    %c0_i32_0 = arith.constant 0 : i32
    return %arg0, %c0_i32 : i32, i32
  }
  func.func @transform_1(%arg0: i32, %arg1: i32) -> (i32, i32) {
    %c0_i32 = arith.constant 0 : i32
    %c0_i32_0 = arith.constant 0 : i32
    return %c0_i32, %arg1 : i32, i32
  }
  func.func @transform_2(%arg0: i32, %arg1: i32) -> (i32, i32) {
    %c0_i32 = arith.constant 0 : i32
    %c0_i32_0 = arith.constant 0 : i32
    return %c0_i32, %arg1 : i32, i32
  }
  func.func @transform_3(%arg0: i32, %arg1: i32) -> (i32, i32) {
    %c0_i32 = arith.constant 0 : i32
    return %arg0, %arg1 : i32, i32
  }
}

module attributes {stable_mosaic.version = 11 : i64} {
  func.func @_patch_embed_kernel(%arg0: i32, %arg1: i32, %arg2: memref<32x64xbf16, #tpu.memory_space<vmem>>, %arg3: memref<64x128xbf16, #tpu.memory_space<vmem>>, %arg4: memref<8x128xf32, #tpu.memory_space<vmem>>, %arg5: memref<32x128xf32, #tpu.memory_space<vmem>>) attributes {dimension_semantics = [#tpu.dimension_semantics<parallel>, #tpu.dimension_semantics<parallel>], iteration_bounds = array<i64: 1, 1>, scalar_prefetch = 0 : i64, scratch_operands = 0 : i64, tpu.core_type = #tpu.core_type<tc>, window_params = [{transform_indices = @transform_0, window_bounds = array<i64: 32, 64>}, {transform_indices = @transform_1, window_bounds = array<i64: 64, 128>}, {transform_indices = @transform_2, window_bounds = array<i64: 8, 128>}, {transform_indices = @transform_3, window_bounds = array<i64: 32, 128>}]} {
    %c0 = arith.constant 0 : index
    %c0_0 = arith.constant 0 : index
    %0 = vector.load %arg2[%c0, %c0_0] : memref<32x64xbf16, #tpu.memory_space<vmem>>, vector<32x64xbf16>
    %c0_1 = arith.constant 0 : index
    %c0_2 = arith.constant 0 : index
    %1 = vector.load %arg3[%c0_1, %c0_2] : memref<64x128xbf16, #tpu.memory_space<vmem>>, vector<64x128xbf16>
    %cst = arith.constant dense<0.000000e+00> : vector<32x128xf32>
    %2 = tpu.matmul %0, %1, %cst {dimension_numbers = #tpu.dot_dimension_numbers<[1], [0], [0], [1], [0, 0, 1, 1], [], []>} : vector<32x64xbf16>, vector<64x128xbf16>, vector<32x128xf32> -> vector<32x128xf32>
    %c0_3 = arith.constant 0 : index
    %c0_4 = arith.constant 0 : index
    %3 = vector.load %arg4[%c0_3, %c0_4] : memref<8x128xf32, #tpu.memory_space<vmem>>, vector<1x128xf32>
    %4 = vector.broadcast %3 : vector<1x128xf32> to vector<32x128xf32>
    %5 = arith.addf %2, %4 : vector<32x128xf32>
    %c0_5 = arith.constant 0 : index
    %c0_6 = arith.constant 0 : index
    %6 = vector.load %arg5[%c0_5, %c0_6] : memref<32x128xf32, #tpu.memory_space<vmem>>, vector<32x128xf32>
    tpu.vector_store %arg5[%c0_5, %c0_6], %5 {strides = array<i32>} : memref<32x128xf32, #tpu.memory_space<vmem>>, vector<32x128xf32>,
    return
  }
  func.func @transform_0(%arg0: i32, %arg1: i32) -> (i32, i32) {
    %c0_i32 = arith.constant 0 : i32
    %c0_i32_0 = arith.constant 0 : i32
    return %arg0, %c0_i32 : i32, i32
  }
  func.func @transform_1(%arg0: i32, %arg1: i32) -> (i32, i32) {
    %c0_i32 = arith.constant 0 : i32
    %c0_i32_0 = arith.constant 0 : i32
    return %c0_i32, %arg1 : i32, i32
  }
  func.func @transform_2(%arg0: i32, %arg1: i32) -> (i32, i32) {
    %c0_i32 = arith.constant 0 : i32
    %c0_i32_0 = arith.constant 0 : i32
    return %c0_i32, %arg1 : i32, i32
  }
  func.func @transform_3(%arg0: i32, %arg1: i32) -> (i32, i32) {
    %c0_i32 = arith.constant 0 : i32
    return %arg0, %arg1 : i32, i32
  }
}

</mosaic_0001>

<bundles_post_ra>
// kernel: patch_embed.1
= control target key start
LH: loop header
LB: loop body
LE: loop exit
PB: predicated region body
PF: predicated region fallthrough
CT: control target
= control target key end

     0   :  { %vm67_vm0 = vcmask 523264   ;;  %s248_s0 = inlined_call_operand.vmem [shape: bf16[32,64], index: 0, kind: input, shape index: {}]   ;;  %s249_s1 = inlined_call_operand.vmem [shape: bf16[64,128], index: 1, kind: input, shape index: {}]   ;;  %s250_s2 = inlined_call_operand.vmem [shape: f32[8,128], index: 2, kind: input, shape index: {}]   ;;  %s251_s3 = inlined_call_operand.hbm [shape: f32[32,128], index: 3, kind: output, shape index: {}]  }
   0x1   :  { %v173_v0 = vld [vmem:[%s249_s1 + $0x18] sm:$0xff]   ;;  %v174_v1 = vld [vmem:[%s249_s1 + $0x10] sm:$0xff]   ;;  %v175_v2 = vld [vmem:[%s249_s1 + $0x8] sm:$0xff]  }
   0x2   :  { %158 = vmatprep.subr.bf16.mxu0 %v173_v0  ;;  %v177_v3 = vld [vmem:[%s248_s0] sm:$0xff]  }
   0x3   :  { %159 = vmatpush3.bf16.msra.mxu0 %v173_v0  ;;  %166 = vmatprep.mubr.msk.bf16.mxu0 %vm67_vm0, %v177_v3 }
   0x4   :  { %160 = vmatprep.subr.bf16.mxu0 %v174_v1 }
   0x5   :  { %8 = vsyncpa [#allocation3], 0  ;;  %v176_v4 = vld [vmem:[%s249_s1] sm:$0xff]   ;;  %v178_v5 = vld [vmem:[%s248_s0 + $0x8] sm:$0xff]   ;;  %s201_s26 = smov [#allocation2]  }
   0x6   :  { %v143_v6 = vld [vmem:[%s250_s2] ss:$0 sm:$0xff]  ;;  %s132_s27 = sshll.u32 %s201_s26, 4  ;;  %s133_s27 = int_to_ptr.vmem [resolvable:$true] %s132_s27 }
   0x7   :  { %161 = vmatpush3.bf16.msra.mxu0 %v174_v1  ;;  %s179_s0 = scalar_lea.vmem %s133_s27, 512  ;;  %p184_p1 = scmp.lt.s32.totalorder %s133_s27, %s133_s27 }
   0x8   :  { %162 = vmatprep.subr.bf16.mxu0 %v175_v2  ;;  %p180_p0 = scmp.ne.s32.totalorder %s133_s27, %s179_s0  ;;  %p185_p2 = scmp.lt.s32.totalorder %s179_s0, %s179_s0 }
   0xa   :  { %p186_p3 = por %p185_p2, %p184_p1 }
   0xb   :  { %163 = vmatpush3.bf16.msra.mxu0 %v175_v2 }
   0xc   :  { %164 = vmatprep.subr.bf16.mxu0 %v176_v4  ;;  %p187_p4 = pnand %p186_p3, %p180_p0 }
   0xf   :  { %165 = vmatpush3.bf16.msra.mxu0 %v176_v4 }
  0x12   :  { %167 = vmatmul.mubr.msk.bf16.vlgmr.msra.gmra.mxu0 %vm67_vm0, %v178_v5 }
  0xd2   :  { %v168_v7 = vpop.f32.mrf.mxu0 }
  0xd3   :  { %v117_v8 = vadd.f32 %v168_v7, %v143_v6 }
  0xd4   :  { %v108_v9 = vpop.f32.mrf.mxu0 }
  0xd5   :  { %125 = vst [vmem:[#allocation2 + $0x10] sm:$0xff] %v117_v8  ;;  %v109_v10 = vadd.f32 %v143_v6, %v108_v9 }
  0xd6   :  { %v169_v11 = vpop.f32.mrf.mxu0 }
  0xd7   :  { %123 = vst [vmem:[#allocation2] sm:$0xff] %v109_v10  ;;  %v120_v12 = vadd.f32 %v169_v11, %v143_v6 }
  0xd8   :  { %v111_v13 = vpop.f32.mrf.mxu0 }
  0xd9   :  { %126 = vst [vmem:[#allocation2 + $0x18] sm:$0xff] %v120_v12  ;;  %v112_v14 = vadd.f32 %v143_v6, %v111_v13 }
  0xdb   :  { %124 = vst [vmem:[#allocation2 + $0x8] sm:$0xff] %v112_v14 }
  0xdc   :  { %190 = shalt.err (!%p187_p4)
}
  0xdd   :  { %s202_s1 = smov 128   ;;  %s203_s2 = smov 8  }
  0xde   :  { %138 = dma.vmem_to_hbm [thread:$0]  %s133_s27, 512, %s251_s3, [#allocation3], %s202_s1, %s202_s1, %s203_s2  }
  0xdf   :  { %199 = dma.done.wait [#allocation3], 512  }
  0xe0   :  { %200 = vsyncadd [#allocation3], 4294966784 }
  0xe1   :  { %142 = vsyncpa [#allocation3], 1 }

// kernel: patch_embed.1
= control target key start
LH: loop header
LB: loop body
LE: loop exit
PB: predicated region body
PF: predicated region fallthrough
CT: control target
= control target key end

     0   :  { %vm67_vm0 = vcmask 523264   ;;  %s248_s0 = inlined_call_operand.vmem [shape: bf16[32,64], index: 0, kind: input, shape index: {}]   ;;  %s249_s1 = inlined_call_operand.vmem [shape: bf16[64,128], index: 1, kind: input, shape index: {}]   ;;  %s250_s2 = inlined_call_operand.vmem [shape: f32[8,128], index: 2, kind: input, shape index: {}]   ;;  %s251_s3 = inlined_call_operand.hbm [shape: f32[32,128], index: 3, kind: output, shape index: {}]  }
   0x1   :  { %v173_v0 = vld [vmem:[%s249_s1 + $0x18] sm:$0xff]   ;;  %v174_v1 = vld [vmem:[%s249_s1 + $0x10] sm:$0xff]   ;;  %v175_v2 = vld [vmem:[%s249_s1 + $0x8] sm:$0xff]  }
   0x2   :  { %158 = vmatprep.subr.bf16.mxu0 %v173_v0  ;;  %v177_v3 = vld [vmem:[%s248_s0] sm:$0xff]  }
   0x3   :  { %159 = vmatpush3.bf16.msra.mxu0 %v173_v0  ;;  %166 = vmatprep.mubr.msk.bf16.mxu0 %vm67_vm0, %v177_v3 }
   0x4   :  { %160 = vmatprep.subr.bf16.mxu0 %v174_v1 }
   0x5   :  { %8 = vsyncpa [#allocation3], 0  ;;  %v176_v4 = vld [vmem:[%s249_s1] sm:$0xff]   ;;  %v178_v5 = vld [vmem:[%s248_s0 + $0x8] sm:$0xff]   ;;  %s201_s26 = smov [#allocation2]  }
   0x6   :  { %v143_v6 = vld [vmem:[%s250_s2] ss:$0 sm:$0xff]  ;;  %s132_s27 = sshll.u32 %s201_s26, 4  ;;  %s133_s27 = int_to_ptr.vmem [resolvable:$true] %s132_s27 }
   0x7   :  { %161 = vmatpush3.bf16.msra.mxu0 %v174_v1  ;;  %s179_s0 = scalar_lea.vmem %s133_s27, 512  ;;  %p184_p1 = scmp.lt.s32.totalorder %s133_s27, %s133_s27 }
   0x8   :  { %162 = vmatprep.subr.bf16.mxu0 %v175_v2  ;;  %p180_p0 = scmp.ne.s32.totalorder %s133_s27, %s179_s0  ;;  %p185_p2 = scmp.lt.s32.totalorder %s179_s0, %s179_s0 }
   0xa   :  { %p186_p3 = por %p185_p2, %p184_p1 }
   0xb   :  { %163 = vmatpush3.bf16.msra.mxu0 %v175_v2 }
   0xc   :  { %164 = vmatprep.subr.bf16.mxu0 %v176_v4  ;;  %p187_p4 = pnand %p186_p3, %p180_p0 }
   0xf   :  { %165 = vmatpush3.bf16.msra.mxu0 %v176_v4 }
  0x12   :  { %167 = vmatmul.mubr.msk.bf16.vlgmr.msra.gmra.mxu0 %vm67_vm0, %v178_v5 }
  0xd2   :  { %v168_v7 = vpop.f32.mrf.mxu0 }
  0xd3   :  { %v117_v8 = vadd.f32 %v168_v7, %v143_v6 }
  0xd4   :  { %v108_v9 = vpop.f32.mrf.mxu0 }
  0xd5   :  { %125 = vst [vmem:[#allocation2 + $0x10] sm:$0xff] %v117_v8  ;;  %v109_v10 = vadd.f32 %v143_v6, %v108_v9 }
  0xd6   :  { %v169_v11 = vpop.f32.mrf.mxu0 }
  0xd7   :  { %123 = vst [vmem:[#allocation2] sm:$0xff] %v109_v10  ;;  %v120_v12 = vadd.f32 %v169_v11, %v143_v6 }
  0xd8   :  { %v111_v13 = vpop.f32.mrf.mxu0 }
  0xd9   :  { %126 = vst [vmem:[#allocation2 + $0x18] sm:$0xff] %v120_v12  ;;  %v112_v14 = vadd.f32 %v143_v6, %v111_v13 }
  0xdb   :  { %124 = vst [vmem:[#allocation2 + $0x8] sm:$0xff] %v112_v14 }
  0xdc   :  { %190 = shalt.err (!%p187_p4)
}
  0xdd   :  { %s202_s1 = smov 128   ;;  %s203_s2 = smov 8  }
  0xde   :  { %138 = dma.vmem_to_hbm [thread:$0]  %s133_s27, 512, %s251_s3, [#allocation3], %s202_s1, %s202_s1, %s203_s2  }
  0xdf   :  { %199 = dma.done.wait [#allocation3], 512  }
  0xe0   :  { %200 = vsyncadd [#allocation3], 4294966784 }
  0xe1   :  { %142 = vsyncpa [#allocation3], 1 }

</bundles_post_ra>
